<compile_context>
chip_gen: v7x
topology: tpu7x:2x2x1
jax: 0.10.0
libtpu: 0.0.40
codegen_flags: <defaults>
</compile_context>

<pallas_src>
import functools

import jax
import jax.numpy as jnp
from jax.experimental import pallas as pl
from jax.experimental.pallas import tpu as pltpu

NEG_SLOPE = 0.01  # nn.LeakyReLU() default negative_slope
LANE = 128


def _leaky_relu(x):
    # For 0 < slope < 1, leaky_relu(x) == max(x, slope * x).
    return jnp.maximum(x, NEG_SLOPE * x)


def _round_up(n, m):
    return ((n + m - 1) // m) * m


def _pad_to(a, shape):
    pads = [(0, t - s) for s, t in zip(a.shape, shape)]
    return jnp.pad(a, pads)


def mlp5_kernel(x_ref, w1_ref, wmid_ref, b_ref, w5_ref, o_ref):
    """Whole 5-layer forward on one lane-dense (128-padded) batch tile.

    x_ref   : (bt, in_p)        compute dtype
    w1_ref  : (in_p, id_p)      compute dtype
    wmid_ref: (3, id_p, id_p)   compute dtype (w2, w3, w4 stacked)
    b_ref   : (4, id_p)         f32 (b1..b4 stacked; padded entries are 0)
    w5_ref  : (id_p, out_p)     compute dtype (linear5 has no bias)
    o_ref   : (bt, out_p)
    """
    cdt = w1_ref.dtype

    # Layer 1 (MXU matmul, f32 accumulation; bias add + LeakyReLU on the VPU).
    h = jnp.dot(x_ref[...], w1_ref[...], preferred_element_type=jnp.float32)
    h = _leaky_relu(h + b_ref[0])

    # Layers 2-4 (static unroll; wmid_ref[k] is a static-index (id_p, id_p) tile).
    for k in range(3):
        h = jnp.dot(h.astype(cdt), wmid_ref[k], preferred_element_type=jnp.float32)
        h = _leaky_relu(h + b_ref[k + 1])

    # Layer 5 (bias-free).
    out = jnp.dot(h.astype(cdt), w5_ref[...], preferred_element_type=jnp.float32)
    o_ref[...] = out.astype(o_ref.dtype)


@functools.partial(jax.jit, static_argnames=("batch_tile", "compute_dtype"))
def passive_model_layer5_forward(x, params, batch_tile=None, compute_dtype=None):
    """x: (B, input_dim). params: dict of weights/biases. Returns (B, output_dim)."""
    B, input_dim = x.shape
    intern_dim = params["w1"].shape[1]
    output_dim = params["w5"].shape[1]

    # Lane-dense padded feature dims (exact: zero pads + LeakyReLU(0)=0).
    in_p = _round_up(input_dim, LANE)
    id_p = _round_up(intern_dim, LANE)
    out_p = _round_up(output_dim, LANE)

    # Batch tiling: few fat steps; the axis is "parallel" for megacore sharding.
    if batch_tile is None:
        batch_tile = max(8, min(512, _round_up(B, 8)))
    B_p = _round_up(max(B, batch_tile), batch_tile)
    grid = (B_p // batch_tile,)

    cdt = jnp.dtype(compute_dtype) if compute_dtype is not None else x.dtype

    # Pad + pack operands (wrapper-side layout plumbing, not compute hoisting).
    xp = _pad_to(x, (B_p, in_p)).astype(cdt)
    w1 = _pad_to(params["w1"], (in_p, id_p)).astype(cdt)
    wmid = jnp.stack(
        [_pad_to(params[f"w{k}"], (id_p, id_p)) for k in (2, 3, 4)]
    ).astype(cdt)
    w5 = _pad_to(params["w5"], (id_p, out_p)).astype(cdt)
    bstk = jnp.stack(
        [_pad_to(params[f"b{k}"].reshape(-1), (id_p,)) for k in (1, 2, 3, 4)]
    ).astype(jnp.float32)

    in_specs = [
        pl.BlockSpec((batch_tile, in_p), lambda i: (i, 0)),   # x (tiled over batch)
        pl.BlockSpec((in_p, id_p), lambda i: (0, 0)),         # w1     (resident)
        pl.BlockSpec((3, id_p, id_p), lambda i: (0, 0, 0)),   # w2..w4 (resident)
        pl.BlockSpec((4, id_p), lambda i: (0, 0)),            # b1..b4 (resident)
        pl.BlockSpec((id_p, out_p), lambda i: (0, 0)),        # w5     (resident)
    ]
    out_spec = pl.BlockSpec((batch_tile, out_p), lambda i: (i, 0))

    itemsize_act = jnp.dtype(x.dtype).itemsize
    itemsize_w = jnp.dtype(cdt).itemsize
    flops = 2 * B_p * (in_p * id_p + 3 * id_p * id_p + id_p * out_p)
    bytes_accessed = (
        (B_p * in_p + B_p * out_p) * itemsize_act
        + (w1.size + wmid.size + w5.size) * itemsize_w
        + bstk.size * 4
    )

    out_padded = pl.pallas_call(
        mlp5_kernel,
        out_shape=jax.ShapeDtypeStruct((B_p, out_p), x.dtype),
        grid_spec=pltpu.PrefetchScalarGridSpec(
            num_scalar_prefetch=0,
            grid=grid,
            in_specs=in_specs,
            out_specs=out_spec,
        ),
        compiler_params=pltpu.CompilerParams(
            dimension_semantics=("parallel",),
        ),
        cost_estimate=pl.CostEstimate(
            flops=flops, transcendentals=0, bytes_accessed=bytes_accessed
        ),
    )(xp, w1, wmid, bstk, w5)

    return out_padded[:B, :output_dim]


def init_params(key, input_dim, intern_dim, output_dim, dtype=jnp.float32):
    """Deterministic synthetic params. PyTorch Linear weight is (out, in);
    here we store the transpose (in, out). Biases kept 2D (1, out)."""
    ks = jax.random.split(key, 9)

    def lin_w(k, fan_in, fan_out):
        bound = 1.0 / jnp.sqrt(fan_in)
        return jax.random.uniform(k, (fan_in, fan_out), dtype, -bound, bound)

    def lin_b(k, fan_in, fan_out):
        bound = 1.0 / jnp.sqrt(fan_in)
        return jax.random.uniform(k, (1, fan_out), dtype, -bound, bound)

    return {
        "w1": lin_w(ks[0], input_dim, intern_dim),  "b1": lin_b(ks[1], input_dim, intern_dim),
        "w2": lin_w(ks[2], intern_dim, intern_dim), "b2": lin_b(ks[3], intern_dim, intern_dim),
        "w3": lin_w(ks[4], intern_dim, intern_dim), "b3": lin_b(ks[5], intern_dim, intern_dim),
        "w4": lin_w(ks[6], intern_dim, intern_dim), "b4": lin_b(ks[7], intern_dim, intern_dim),
        "w5": lin_w(ks[8], intern_dim, output_dim),  # linear5 has bias=False
    }


def reference_forward(x, p):
    """Pure-JAX reference replicating the PyTorch forward exactly."""
    h = _leaky_relu(x @ p["w1"] + p["b1"])
    h = _leaky_relu(h @ p["w2"] + p["b2"])
    h = _leaky_relu(h @ p["w3"] + p["b3"])
    h = _leaky_relu(h @ p["w4"] + p["b4"])
    return h @ p["w5"]


if __name__ == "__main__":
    # Small shapes consistent with the module: batch=8, input_dim=16,
    # intern_dim=32, output_dim=8.
    batch, input_dim, intern_dim, output_dim = 8, 16, 32, 8

    key = jax.random.PRNGKey(0)
    kx, kp = jax.random.split(key)
    x = jax.random.normal(kx, (batch, input_dim), jnp.float32)
    params = init_params(kp, input_dim, intern_dim, output_dim)

    out = passive_model_layer5_forward(x, params)
    out = jax.block_until_ready(out)

    ref = reference_forward(x, params)
    assert out.shape == (batch, output_dim)
    assert jnp.allclose(out, ref, atol=1e-5, rtol=1e-5), "mismatch vs JAX reference"

    # Also exercise a multi-step grid (batch padded/tiled path).
    x2 = jax.random.normal(kx, (24, input_dim), jnp.float32)
    out2 = jax.block_until_ready(
        passive_model_layer5_forward(x2, params, batch_tile=8)
    )
    ref2 = reference_forward(x2, params)
    assert out2.shape == (24, output_dim)
    assert jnp.allclose(out2, ref2, atol=1e-5, rtol=1e-5), "mismatch (tiled) vs reference"

    print("KERNEL_OK")
</pallas_src>

<mosaic_0001>
module attributes {stable_mosaic.version = 11 : i64} {
  func.func @mlp5_kernel(%arg0: i32, %arg1: memref<8x128xf32, #tpu.memory_space<vmem>>, %arg2: memref<128x128xf32, #tpu.memory_space<vmem>>, %arg3: memref<3x128x128xf32, #tpu.memory_space<vmem>>, %arg4: memref<4x128xf32, #tpu.memory_space<vmem>>, %arg5: memref<128x128xf32, #tpu.memory_space<vmem>>, %arg6: memref<8x128xf32, #tpu.memory_space<vmem>>) attributes {dimension_semantics = [#tpu.dimension_semantics<parallel>], iteration_bounds = array<i64: 1>, scalar_prefetch = 0 : i64, scratch_operands = 0 : i64, tpu.core_type = #tpu.core_type<tc>, window_params = [{transform_indices = @transform_0, window_bounds = array<i64: 8, 128>}, {pipeline_mode = #tpu.pipeline_mode<synchronous>, transform_indices = @transform_1, window_bounds = array<i64: 128, 128>}, {pipeline_mode = #tpu.pipeline_mode<synchronous>, transform_indices = @transform_2, window_bounds = array<i64: 3, 128, 128>}, {pipeline_mode = #tpu.pipeline_mode<synchronous>, transform_indices = @transform_3, window_bounds = array<i64: 4, 128>}, {pipeline_mode = #tpu.pipeline_mode<synchronous>, transform_indices = @transform_4, window_bounds = array<i64: 128, 128>}, {transform_indices = @transform_5, window_bounds = array<i64: 8, 128>}]} {
    %c0 = arith.constant 0 : index
    %c0_0 = arith.constant 0 : index
    %0 = vector.load %arg1[%c0, %c0_0] : memref<8x128xf32, #tpu.memory_space<vmem>>, vector<8x128xf32>
    %c0_1 = arith.constant 0 : index
    %c0_2 = arith.constant 0 : index
    %1 = vector.load %arg2[%c0_1, %c0_2] : memref<128x128xf32, #tpu.memory_space<vmem>>, vector<128x128xf32>
    %cst = arith.constant dense<0.000000e+00> : vector<8x128xf32>
    %2 = tpu.matmul %0, %1, %cst {dimension_numbers = #tpu.dot_dimension_numbers<[1], [0], [0], [1], [0, 0, 1, 1], [], []>} : vector<8x128xf32>, vector<128x128xf32>, vector<8x128xf32> -> vector<8x128xf32>
    %c0_3 = arith.constant 0 : index
    %c0_4 = arith.constant 0 : index
    %3 = vector.load %arg4[%c0_3, %c0_4] : memref<4x128xf32, #tpu.memory_space<vmem>>, vector<1x128xf32>
    %4 = vector.shape_cast %3 : vector<1x128xf32> to vector<128xf32>
    %5 = vector.shape_cast %4 : vector<128xf32> to vector<1x128xf32>
    %6 = vector.broadcast %5 : vector<1x128xf32> to vector<8x128xf32>
    %7 = arith.addf %2, %6 : vector<8x128xf32>
    %cst_5 = arith.constant 0.00999999977 : f32
    %8 = vector.broadcast %cst_5 : f32 to vector<8x128xf32>
    %9 = arith.mulf %8, %7 : vector<8x128xf32>
    %10 = arith.maximumf %7, %9 : vector<8x128xf32>
    %c0_6 = arith.constant 0 : index
    %c0_7 = arith.constant 0 : index
    %c0_8 = arith.constant 0 : index
    %11 = vector.load %arg3[%c0_6, %c0_7, %c0_8] : memref<3x128x128xf32, #tpu.memory_space<vmem>>, vector<1x128x128xf32>
    %12 = vector.shape_cast %11 : vector<1x128x128xf32> to vector<128x128xf32>
    %cst_9 = arith.constant dense<0.000000e+00> : vector<8x128xf32>
    %13 = tpu.matmul %10, %12, %cst_9 {dimension_numbers = #tpu.dot_dimension_numbers<[1], [0], [0], [1], [0, 0, 1, 1], [], []>} : vector<8x128xf32>, vector<128x128xf32>, vector<8x128xf32> -> vector<8x128xf32>
    %c1 = arith.constant 1 : index
    %c0_10 = arith.constant 0 : index
    %14 = vector.load %arg4[%c1, %c0_10] : memref<4x128xf32, #tpu.memory_space<vmem>>, vector<1x128xf32>
    %15 = vector.shape_cast %14 : vector<1x128xf32> to vector<128xf32>
    %16 = vector.shape_cast %15 : vector<128xf32> to vector<1x128xf32>
    %17 = vector.broadcast %16 : vector<1x128xf32> to vector<8x128xf32>
    %18 = arith.addf %13, %17 : vector<8x128xf32>
    %cst_11 = arith.constant 0.00999999977 : f32
    %19 = vector.broadcast %cst_11 : f32 to vector<8x128xf32>
    %20 = arith.mulf %19, %18 : vector<8x128xf32>
    %21 = arith.maximumf %18, %20 : vector<8x128xf32>
    %c1_12 = arith.constant 1 : index
    %c0_13 = arith.constant 0 : index
    %c0_14 = arith.constant 0 : index
    %22 = vector.load %arg3[%c1_12, %c0_13, %c0_14] : memref<3x128x128xf32, #tpu.memory_space<vmem>>, vector<1x128x128xf32>
    %23 = vector.shape_cast %22 : vector<1x128x128xf32> to vector<128x128xf32>
    %cst_15 = arith.constant dense<0.000000e+00> : vector<8x128xf32>
    %24 = tpu.matmul %21, %23, %cst_15 {dimension_numbers = #tpu.dot_dimension_numbers<[1], [0], [0], [1], [0, 0, 1, 1], [], []>} : vector<8x128xf32>, vector<128x128xf32>, vector<8x128xf32> -> vector<8x128xf32>
    %c2 = arith.constant 2 : index
    %c0_16 = arith.constant 0 : index
    %25 = vector.load %arg4[%c2, %c0_16] : memref<4x128xf32, #tpu.memory_space<vmem>>, vector<1x128xf32>
    %26 = vector.shape_cast %25 : vector<1x128xf32> to vector<128xf32>
    %27 = vector.shape_cast %26 : vector<128xf32> to vector<1x128xf32>
    %28 = vector.broadcast %27 : vector<1x128xf32> to vector<8x128xf32>
    %29 = arith.addf %24, %28 : vector<8x128xf32>
    %cst_17 = arith.constant 0.00999999977 : f32
    %30 = vector.broadcast %cst_17 : f32 to vector<8x128xf32>
    %31 = arith.mulf %30, %29 : vector<8x128xf32>
    %32 = arith.maximumf %29, %31 : vector<8x128xf32>
    %c2_18 = arith.constant 2 : index
    %c0_19 = arith.constant 0 : index
    %c0_20 = arith.constant 0 : index
    %33 = vector.load %arg3[%c2_18, %c0_19, %c0_20] : memref<3x128x128xf32, #tpu.memory_space<vmem>>, vector<1x128x128xf32>
    %34 = vector.shape_cast %33 : vector<1x128x128xf32> to vector<128x128xf32>
    %cst_21 = arith.constant dense<0.000000e+00> : vector<8x128xf32>
    %35 = tpu.matmul %32, %34, %cst_21 {dimension_numbers = #tpu.dot_dimension_numbers<[1], [0], [0], [1], [0, 0, 1, 1], [], []>} : vector<8x128xf32>, vector<128x128xf32>, vector<8x128xf32> -> vector<8x128xf32>
    %c3 = arith.constant 3 : index
    %c0_22 = arith.constant 0 : index
    %36 = vector.load %arg4[%c3, %c0_22] : memref<4x128xf32, #tpu.memory_space<vmem>>, vector<1x128xf32>
    %37 = vector.shape_cast %36 : vector<1x128xf32> to vector<128xf32>
    %38 = vector.shape_cast %37 : vector<128xf32> to vector<1x128xf32>
    %39 = vector.broadcast %38 : vector<1x128xf32> to vector<8x128xf32>
    %40 = arith.addf %35, %39 : vector<8x128xf32>
    %cst_23 = arith.constant 0.00999999977 : f32
    %41 = vector.broadcast %cst_23 : f32 to vector<8x128xf32>
    %42 = arith.mulf %41, %40 : vector<8x128xf32>
    %43 = arith.maximumf %40, %42 : vector<8x128xf32>
    %c0_24 = arith.constant 0 : index
    %c0_25 = arith.constant 0 : index
    %44 = vector.load %arg5[%c0_24, %c0_25] : memref<128x128xf32, #tpu.memory_space<vmem>>, vector<128x128xf32>
    %cst_26 = arith.constant dense<0.000000e+00> : vector<8x128xf32>
    %45 = tpu.matmul %43, %44, %cst_26 {dimension_numbers = #tpu.dot_dimension_numbers<[1], [0], [0], [1], [0, 0, 1, 1], [], []>} : vector<8x128xf32>, vector<128x128xf32>, vector<8x128xf32> -> vector<8x128xf32>
    %c0_27 = arith.constant 0 : index
    %c0_28 = arith.constant 0 : index
    %46 = vector.load %arg6[%c0_27, %c0_28] : memref<8x128xf32, #tpu.memory_space<vmem>>, vector<8x128xf32>
    tpu.vector_store %arg6[%c0_27, %c0_28], %45 {strides = array<i32>} : memref<8x128xf32, #tpu.memory_space<vmem>>, vector<8x128xf32>,
    return
  }
  func.func @transform_0(%arg0: i32) -> (i32, i32) {
    %c0_i32 = arith.constant 0 : i32
    %c0_i32_0 = arith.constant 0 : i32
    return %arg0, %c0_i32 : i32, i32
  }
  func.func @transform_1(%arg0: i32) -> (i32, i32) {
    %c0_i32 = arith.constant 0 : i32
    %c0_i32_0 = arith.constant 0 : i32
    %c0_i32_1 = arith.constant 0 : i32
    return %c0_i32, %c0_i32_0 : i32, i32
  }
  func.func @transform_2(%arg0: i32) -> (i32, i32, i32) {
    %c0_i32 = arith.constant 0 : i32
    %c0_i32_0 = arith.constant 0 : i32
    %c0_i32_1 = arith.constant 0 : i32
    %c0_i32_2 = arith.constant 0 : i32
    return %c0_i32, %c0_i32_0, %c0_i32_1 : i32, i32, i32
  }
  func.func @transform_3(%arg0: i32) -> (i32, i32) {
    %c0_i32 = arith.constant 0 : i32
    %c0_i32_0 = arith.constant 0 : i32
    %c0_i32_1 = arith.constant 0 : i32
    return %c0_i32, %c0_i32_0 : i32, i32
  }
  func.func @transform_4(%arg0: i32) -> (i32, i32) {
    %c0_i32 = arith.constant 0 : i32
    %c0_i32_0 = arith.constant 0 : i32
    %c0_i32_1 = arith.constant 0 : i32
    return %c0_i32, %c0_i32_0 : i32, i32
  }
  func.func @transform_5(%arg0: i32) -> (i32, i32) {
    %c0_i32 = arith.constant 0 : i32
    %c0_i32_0 = arith.constant 0 : i32
    return %arg0, %c0_i32 : i32, i32
  }
}

</mosaic_0001>

<bundles_post_ra>
// kernel: passive_model_layer5_forward.1
= control target key start
LH: loop header
LB: loop body
LE: loop exit
PB: predicated region body
PF: predicated region fallthrough
CT: control target
= control target key end

     0   :  { %v941_v3 = vmov 0.0|0.0   ;;  %vm942_vm0 = vmmov 0   ;;  %v943_v6 = vmov 0.0   ;;  %s1292_s0 = inlined_call_operand.vmem [shape: f32[8,128], index: 0, kind: input, shape index: {}]   ;;  %s1293_s1 = inlined_call_operand.vmem [shape: f32[128,128], index: 1, kind: input, shape index: {}]   ;;  %s1294_s2 = inlined_call_operand.vmem [shape: f32[3,128,128], index: 2, kind: input, shape index: {}]   ;;  %s1295_s3 = inlined_call_operand.vmem [shape: f32[4,128], index: 3, kind: input, shape index: {}]   ;;  %s1296_s4 = inlined_call_operand.vmem [shape: f32[128,128], index: 4, kind: input, shape index: {}]   ;;  %s1297_s5 = inlined_call_operand.hbm [shape: f32[8,128], index: 5, kind: output, shape index: {}]  }
   0x1   :  { %v22_v0 = vld [vmem:[%s1293_s1] sm:$0xff]  ;;  %v23_v1 = vld [vmem:[%s1293_s1 + $0x8] sm:$0xff]  ;;  %v24_v2 = vld [vmem:[%s1293_s1 + $0x10] sm:$0xff]  ;;  %793 = vmatprep.subr.bf16.mxu0 %v941_v3  ;;  %650 = vmatprep.mubr.msk.f32.mxu0 %vm942_vm0, %v943_v6 }
   0x2   :  { %v794_v4 = vpack.c.bf16 %v23_v1, %v22_v0  ;;  %v25_v5 = vld [vmem:[%s1293_s1 + $0x18] sm:$0xff]  ;;  %817 = vmatprep.subr.bf16.mxu1 %v941_v3  ;;  %685 = vmatprep.mubr.msk.f32.mxu1 %vm942_vm0, %v943_v6  ;;  %v26_v8 = vld [vmem:[%s1293_s1 + $0x20] sm:$0xff]  ;;  %v27_v9 = vld [vmem:[%s1293_s1 + $0x28] sm:$0xff] }
   0x3   :  { %v797_v7 = vpack.c.bf16 %v25_v5, %v24_v2  ;;  %v115_v10 = vld [vmem:[%s1294_s2] sm:$0xff]  ;;  %v116_v11 = vld [vmem:[%s1294_s2 + $0x8] sm:$0xff]  ;;  %v117_v12 = vld [vmem:[%s1294_s2 + $0x10] sm:$0xff]  ;;  %v800_v14 = vpack.c.bf16 %v27_v9, %v26_v8 }
   0x4   :  { %795 = vmatpush3.bf16.msra.mxu0 %v794_v4  ;;  %v118_v13 = vld [vmem:[%s1294_s2 + $0x18] sm:$0xff]  ;;  %v818_v15 = vpack.c.bf16 %v116_v11, %v115_v10  ;;  %v28_v16 = vld [vmem:[%s1293_s1 + $0x30] sm:$0xff]  ;;  %v119_v19 = vld [vmem:[%s1294_s2 + $0x20] sm:$0xff] }
   0x5   :  { %796 = vmatprep.subr.bf16.mxu0 %v941_v3  ;;  %v29_v17 = vld [vmem:[%s1293_s1 + $0x38] sm:$0xff]  ;;  %v821_v18 = vpack.c.bf16 %v118_v13, %v117_v12  ;;  %v120_v20 = vld [vmem:[%s1294_s2 + $0x28] sm:$0xff] }
   0x6   :  { %819 = vmatpush3.bf16.msra.mxu1 %v818_v15 }
   0x7   :  { %820 = vmatprep.subr.bf16.mxu1 %v941_v3 }
   0x8   :  { %798 = vmatpush3.bf16.msra.mxu0 %v797_v7 }
   0x9   :  { %799 = vmatprep.subr.bf16.mxu0 %v941_v3 }
   0xa   :  { %10 = vsyncpa [#allocation3], 0  ;;  %v803_v21 = vpack.c.bf16 %v29_v17, %v28_v16  ;;  %v30_v22 = vld [vmem:[%s1293_s1 + $0x40] sm:$0xff]  ;;  %v31_v23 = vld [vmem:[%s1293_s1 + $0x48] sm:$0xff]  ;;  %822 = vmatpush3.bf16.msra.mxu1 %v821_v18  ;;  %v824_v24 = vpack.c.bf16 %v120_v20, %v119_v19 }
   0xb   :  { %823 = vmatprep.subr.bf16.mxu1 %v941_v3  ;;  %v121_v25 = vld [vmem:[%s1294_s2 + $0x30] sm:$0xff]  ;;  %v122_v26 = vld [vmem:[%s1294_s2 + $0x38] sm:$0xff]  ;;  %v806_v27 = vpack.c.bf16 %v31_v23, %v30_v22  ;;  %v123_v31 = vld [vmem:[%s1294_s2 + $0x40] sm:$0xff] }
   0xc   :  { %801 = vmatpush3.bf16.msra.mxu0 %v800_v14  ;;  %v32_v28 = vld [vmem:[%s1293_s1 + $0x50] sm:$0xff]  ;;  %v33_v29 = vld [vmem:[%s1293_s1 + $0x58] sm:$0xff]  ;;  %v827_v30 = vpack.c.bf16 %v122_v26, %v121_v25  ;;  %v124_v32 = vld [vmem:[%s1294_s2 + $0x48] sm:$0xff] }
   0xd   :  { %802 = vmatprep.subr.bf16.mxu0 %v941_v3  ;;  %v809_v33 = vpack.c.bf16 %v33_v29, %v32_v28  ;;  %v34_v34 = vld [vmem:[%s1293_s1 + $0x60] sm:$0xff]  ;;  %v35_v35 = vld [vmem:[%s1293_s1 + $0x68] sm:$0xff]  ;;  %v830_v36 = vpack.c.bf16 %v124_v32, %v123_v31  ;;  %v125_v37 = vld [vmem:[%s1294_s2 + $0x50] sm:$0xff] }
   0xe   :  { %825 = vmatpush3.bf16.msra.mxu1 %v824_v24  ;;  %v126_v38 = vld [vmem:[%s1294_s2 + $0x58] sm:$0xff]  ;;  %v812_v39 = vpack.c.bf16 %v35_v35, %v34_v34  ;;  %v36_v40 = vld [vmem:[%s1293_s1 + $0x70] sm:$0xff]  ;;  %v21_v44 = vld [vmem:[%s1292_s0] sm:$0xff] }
   0xf   :  { %826 = vmatprep.subr.bf16.mxu1 %v941_v3  ;;  %v37_v41 = vld [vmem:[%s1293_s1 + $0x78] sm:$0xff]  ;;  %v833_v42 = vpack.c.bf16 %v126_v38, %v125_v37  ;;  %v127_v45 = vld [vmem:[%s1294_s2 + $0x60] sm:$0xff]  ;;  %v128_v46 = vld [vmem:[%s1294_s2 + $0x68] sm:$0xff] }
  0x10   :  { %804 = vmatpush3.bf16.msra.mxu0 %v803_v21  ;;  %v815_v43 = vpack.c.bf16 %v37_v41, %v36_v40  ;;  %v836_v47 = vpack.c.bf16 %v128_v46, %v127_v45  ;;  %v129_v48 = vld [vmem:[%s1294_s2 + $0x70] sm:$0xff]  ;;  %v130_v49 = vld [vmem:[%s1294_s2 + $0x78] sm:$0xff]  ;;  %v499_v51 = vld [vmem:[%s1294_s2 + $0x80] sm:$0xff] }
  0x11   :  { %805 = vmatprep.subr.bf16.mxu0 %v941_v3  ;;  %v839_v50 = vpack.c.bf16 %v130_v49, %v129_v48  ;;  %v500_v52 = vld [vmem:[%s1294_s2 + $0x88] sm:$0xff]  ;;  %v501_v53 = vld [vmem:[%s1294_s2 + $0x90] sm:$0xff]  ;;  %v502_v55 = vld [vmem:[%s1294_s2 + $0x98] sm:$0xff] }
  0x12   :  { %828 = vmatpush3.bf16.msra.mxu1 %v827_v30  ;;  %v842_v54 = vpack.c.bf16 %v500_v52, %v499_v51  ;;  %v845_v56 = vpack.c.bf16 %v502_v55, %v501_v53  ;;  %v503_v57 = vld [vmem:[%s1294_s2 + $0xa0] sm:$0xff]  ;;  %v504_v58 = vld [vmem:[%s1294_s2 + $0xa8] sm:$0xff]  ;;  %v505_v60 = vld [vmem:[%s1294_s2 + $0xb0] sm:$0xff] }
  0x13   :  { %829 = vmatprep.subr.bf16.mxu1 %v941_v3  ;;  %v848_v59 = vpack.c.bf16 %v504_v58, %v503_v57  ;;  %v506_v61 = vld [vmem:[%s1294_s2 + $0xb8] sm:$0xff]  ;;  %v507_v63 = vld [vmem:[%s1294_s2 + $0xc0] sm:$0xff]  ;;  %v508_v0 = vld [vmem:[%s1294_s2 + $0xc8] sm:$0xff] }
  0x14   :  { %807 = vmatpush3.bf16.msra.mxu0 %v806_v27  ;;  %v851_v62 = vpack.c.bf16 %v506_v61, %v505_v60  ;;  %v854_v1 = vpack.c.bf16 %v508_v0, %v507_v63  ;;  %v509_v2 = vld [vmem:[%s1294_s2 + $0xd0] sm:$0xff]  ;;  %v510_v4 = vld [vmem:[%s1294_s2 + $0xd8] sm:$0xff]  ;;  %v497_v7 = vld [vmem:[%s1295_s3] ss:$0 sm:$0xff] }
  0x15   :  { %808 = vmatprep.subr.bf16.mxu0 %v941_v3  ;;  %v857_v5 = vpack.c.bf16 %v510_v4, %v509_v2  ;;  %v511_v13 = vld [vmem:[%s1294_s2 + $0xe0] sm:$0xff]  ;;  %v512_v14 = vld [vmem:[%s1294_s2 + $0xe8] sm:$0xff]  ;;  %v513_v16 = vld [vmem:[%s1294_s2 + $0xf0] sm:$0xff] }
  0x16   :  { %831 = vmatpush3.bf16.msra.mxu1 %v830_v36  ;;  %v860_v15 = vpack.c.bf16 %v512_v14, %v511_v13  ;;  %v514_v17 = vld [vmem:[%s1294_s2 + $0xf8] sm:$0xff]  ;;  %v516_v19 = vld [vmem:[%s1294_s2 + $0x100] sm:$0xff]  ;;  %v517_v20 = vld [vmem:[%s1294_s2 + $0x108] sm:$0xff] }
  0x17   :  { %832 = vmatprep.subr.bf16.mxu1 %v941_v3  ;;  %v863_v18 = vpack.c.bf16 %v514_v17, %v513_v16  ;;  %v518_v21 = vld [vmem:[%s1294_s2 + $0x110] sm:$0xff]  ;;  %v866_v22 = vpack.c.bf16 %v517_v20, %v516_v19  ;;  %v519_v23 = vld [vmem:[%s1294_s2 + $0x118] sm:$0xff]  ;;  %v520_v25 = vld [vmem:[%s1294_s2 + $0x120] sm:$0xff] }
  0x18   :  { %810 = vmatpush3.bf16.msra.mxu0 %v809_v33  ;;  %v869_v24 = vpack.c.bf16 %v519_v23, %v518_v21  ;;  %v521_v26 = vld [vmem:[%s1294_s2 + $0x128] sm:$0xff]  ;;  %v522_v28 = vld [vmem:[%s1294_s2 + $0x130] sm:$0xff]  ;;  %v523_v29 = vld [vmem:[%s1294_s2 + $0x138] sm:$0xff] }
  0x19   :  { %811 = vmatprep.subr.bf16.mxu0 %v941_v3  ;;  %v872_v27 = vpack.c.bf16 %v521_v26, %v520_v25  ;;  %v875_v30 = vpack.c.bf16 %v523_v29, %v522_v28  ;;  %v524_v31 = vld [vmem:[%s1294_s2 + $0x140] sm:$0xff]  ;;  %v525_v32 = vld [vmem:[%s1294_s2 + $0x148] sm:$0xff]  ;;  %v526_v34 = vld [vmem:[%s1294_s2 + $0x150] sm:$0xff] }
  0x1a   :  { %834 = vmatpush3.bf16.msra.mxu1 %v833_v42  ;;  %v878_v33 = vpack.c.bf16 %v525_v32, %v524_v31  ;;  %v527_v35 = vld [vmem:[%s1294_s2 + $0x158] sm:$0xff]  ;;  %v498_v37 = vld [vmem:[%s1295_s3 + $0x1] ss:$0 sm:$0xff]  ;;  %v530_v46 = vld [vmem:[%s1294_s2 + $0x170] sm:$0xff] }
  0x1b   :  { %835 = vmatprep.subr.bf16.mxu1 %v941_v3  ;;  %v881_v36 = vpack.c.bf16 %v527_v35, %v526_v34  ;;  %v396_v48 = vld [vmem:[%s1296_s4] sm:$0xff]  ;;  %v397_v49 = vld [vmem:[%s1296_s4 + $0x8] sm:$0xff]  ;;  %v399_v52 = vld [vmem:[%s1296_s4 + $0x18] sm:$0xff] }
  0x1c   :  { %813 = vmatpush3.bf16.msra.mxu0 %v812_v39  ;;  %v890_v51 = vpack.c.bf16 %v397_v49, %v396_v48  ;;  %v401_v55 = vld [vmem:[%s1296_s4 + $0x28] sm:$0xff]  ;;  %v402_v57 = vld [vmem:[%s1296_s4 + $0x30] sm:$0xff]  ;;  %v403_v58 = vld [vmem:[%s1296_s4 + $0x38] sm:$0xff] }
  0x1d   :  { %814 = vmatprep.subr.bf16.mxu0 %v941_v3  ;;  %v404_v60 = vld [vmem:[%s1296_s4 + $0x40] sm:$0xff]  ;;  %v405_v61 = vld [vmem:[%s1296_s4 + $0x48] sm:$0xff]  ;;  %v406_v63 = vld [vmem:[%s1296_s4 + $0x50] sm:$0xff] }
  0x1e   :  { %837 = vmatpush3.bf16.msra.mxu1 %v836_v47  ;;  %v407_v0 = vld [vmem:[%s1296_s4 + $0x58] sm:$0xff]  ;;  %v515_v2 = vld [vmem:[%s1295_s3 + $0x2] ss:$0 sm:$0xff]  ;;  %v410_v13 = vld [vmem:[%s1296_s4 + $0x70] sm:$0xff] }
  0x1f   :  { %838 = vmatprep.subr.bf16.mxu1 %v941_v3  ;;  %v411_v14 = vld [vmem:[%s1296_s4 + $0x78] sm:$0xff]  ;;  %v532_v16 = vld [vmem:[%s1295_s3 + $0x3] ss:$0 sm:$0xff] }
  0x20   :  { %816 = vmatpush3.bf16.msra.mxu0 %v815_v43  ;;  %v528_v43 = vld [vmem:[%s1294_s2 + $0x160] sm:$0xff] }
  0x21   :  { %841 = vmatprep.subr.bf16.mxu0 %v941_v3 }
  0x22   :  { %840 = vmatpush3.bf16.msra.mxu1 %v839_v50  ;;  %v398_v50 = vld [vmem:[%s1296_s4 + $0x10] sm:$0xff] }
  0x23   :  { %651 = vmatmul.mubr.f32.vlgmr.msra.gmra.mrb[0].mxu0 %v21_v44  ;;  %865 = vmatprep.subr.bf16.mxu1 %v941_v3  ;;  %v529_v44 = vld [vmem:[%s1294_s2 + $0x168] sm:$0xff]  ;;  %v893_v53 = vpack.c.bf16 %v399_v52, %v398_v50 }
  0x24   :  { %720 = vmatprep.mubr.msk.f32.mxu0 %vm942_vm0, %v943_v6  ;;  %843 = vmatpush3.bf16.msra.mxu0 %v842_v54  ;;  %v884_v45 = vpack.c.bf16 %v529_v44, %v528_v43  ;;  %v400_v54 = vld [vmem:[%s1296_s4 + $0x20] sm:$0xff] }
  0x25   :  { %844 = vmatprep.subr.bf16.mxu0 %v941_v3 }
  0x28   :  { %846 = vmatpush3.bf16.msra.mxu0 %v845_v56  ;;  %v896_v56 = vpack.c.bf16 %v401_v55, %v400_v54 }
  0x29   :  { %847 = vmatprep.subr.bf16.mxu0 %v941_v3 }
  0x2c   :  { %849 = vmatpush3.bf16.msra.mxu0 %v848_v59  ;;  %v899_v59 = vpack.c.bf16 %v403_v58, %v402_v57 }
  0x2d   :  { %850 = vmatprep.subr.bf16.mxu0 %v941_v3 }
  0x30   :  { %852 = vmatpush3.bf16.msra.mxu0 %v851_v62  ;;  %v902_v62 = vpack.c.bf16 %v405_v61, %v404_v60 }
  0x31   :  { %853 = vmatprep.subr.bf16.mxu0 %v941_v3 }
  0x34   :  { %855 = vmatpush3.bf16.msra.mxu0 %v854_v1  ;;  %v905_v1 = vpack.c.bf16 %v407_v0, %v406_v63 }
  0x35   :  { %856 = vmatprep.subr.bf16.mxu0 %v941_v3 }
  0x38   :  { %858 = vmatpush3.bf16.msra.mxu0 %v857_v5 }
  0x39   :  { %859 = vmatprep.subr.bf16.mxu0 %v941_v3 }
  0x3c   :  { %861 = vmatpush3.bf16.msra.mxu0 %v860_v15  ;;  %v911_v15 = vpack.c.bf16 %v411_v14, %v410_v13 }
  0x3d   :  { %862 = vmatprep.subr.bf16.mxu0 %v941_v3 }
  0x40   :  { %864 = vmatpush3.bf16.msra.mxu0 %v863_v18 }
  0x41   :  { %889 = vmatprep.subr.bf16.mxu0 %v941_v3 }
  0xf6   :  { %v109_v8 = vpop.f32.mrb[0].mxu0 }
  0xf7   :  { %v110_v9 = vadd.f32 %v497_v7, %v109_v8  ;;  %v652_v10 = vpop.f32.mrb[1].mxu0 }
  0xf8   :  { %v408_v10 = vld [vmem:[%s1296_s4 + $0x60] sm:$0xff] }
  0xf9   :  { %v113_v11 = vmul.f32 0.01, %v110_v9 }
  0xfb   :  { %v114_v12 = vmax.f32 %v110_v9, %v113_v11  ;;  %v409_v11 = vld [vmem:[%s1296_s4 + $0x68] sm:$0xff] }
  0xfd   :  { %686 = vmatmul.mubr.f32.vlgmr.msra.gmra.mrb[0].mxu1 %v114_v12  ;;  %v908_v12 = vpack.c.bf16 %v409_v11, %v408_v10 }
  0xfe   :  { %755 = vmatprep.mubr.msk.f32.mxu1 %vm942_vm0, %v943_v6  ;;  %867 = vmatpush3.bf16.msra.mxu1 %v866_v22 }
  0xff   :  { %868 = vmatprep.subr.bf16.mxu1 %v941_v3 }
 0x102   :  { %870 = vmatpush3.bf16.msra.mxu1 %v869_v24 }
 0x103   :  { %871 = vmatprep.subr.bf16.mxu1 %v941_v3 }
 0x106   :  { %873 = vmatpush3.bf16.msra.mxu1 %v872_v27 }
 0x107   :  { %874 = vmatprep.subr.bf16.mxu1 %v941_v3 }
 0x10a   :  { %876 = vmatpush3.bf16.msra.mxu1 %v875_v30 }
 0x10b   :  { %877 = vmatprep.subr.bf16.mxu1 %v941_v3 }
 0x10e   :  { %879 = vmatpush3.bf16.msra.mxu1 %v878_v33 }
 0x10f   :  { %880 = vmatprep.subr.bf16.mxu1 %v941_v3 }
 0x112   :  { %882 = vmatpush3.bf16.msra.mxu1 %v881_v36 }
 0x113   :  { %883 = vmatprep.subr.bf16.mxu1 %v941_v3 }
 0x116   :  { %885 = vmatpush3.bf16.msra.mxu1 %v884_v45 }
 0x117   :  { %886 = vmatprep.subr.bf16.mxu1 %v941_v3 }
 0x1d0   :  { %v202_v38 = vpop.f32.mrb[0].mxu1 }
 0x1d1   :  { %v203_v39 = vadd.f32 %v498_v37, %v202_v38  ;;  %v687_v40 = vpop.f32.mrb[1].mxu1 }
 0x1d3   :  { %v206_v41 = vmul.f32 0.01, %v203_v39 }
 0x1d5   :  { %v207_v42 = vmax.f32 %v203_v39, %v206_v41 }
 0x1d7   :  { %721 = vmatmul.mubr.f32.vlgmr.msra.gmra.mrb[2].mxu0 %v207_v42 }
 0x1d8   :  { %790 = vmatprep.mubr.msk.f32.mxu0 %vm942_vm0, %v943_v6  ;;  %v531_v6 = vld [vmem:[%s1294_s2 + $0x178] sm:$0xff]  ;;  %891 = vmatpush3.bf16.msra.mxu0 %v890_v51  ;;  %s944_s2 = smov [#allocation2]  }
 0x1d9   :  { %v887_v47 = vpack.c.bf16 %v531_v6, %v530_v46  ;;  %892 = vmatprep.subr.bf16.mxu0 %v941_v3  ;;  %s489_s28 = sshll.u32 %s944_s2, 4  ;;  %s490_s28 = int_to_ptr.vmem [resolvable:$true] %s489_s28 }
 0x1da   :  { %s917_s29 = scalar_lea.vmem %s490_s28, 128  ;;  %p922_p1 = scmp.lt.s32.totalorder %s490_s28, %s490_s28 }
 0x1db   :  { %888 = vmatpush3.bf16.msra.mxu1 %v887_v47  ;;  %p918_p0 = scmp.ne.s32.totalorder %s490_s28, %s917_s29  ;;  %p923_p2 = scmp.lt.s32.totalorder %s917_s29, %s917_s29 }
 0x1dc   :  { %894 = vmatpush3.bf16.msra.mxu0 %v893_v53 }
 0x1dd   :  { %895 = vmatprep.subr.bf16.mxu0 %v941_v3  ;;  %p924_p3 = por %p923_p2, %p922_p1 }
 0x1df   :  { %p925_p4 = pnand %p924_p3, %p918_p0 }
 0x1e0   :  { %897 = vmatpush3.bf16.msra.mxu0 %v896_v56 }
 0x1e1   :  { %898 = vmatprep.subr.bf16.mxu0 %v941_v3 }
 0x1e4   :  { %900 = vmatpush3.bf16.msra.mxu0 %v899_v59 }
 0x1e5   :  { %901 = vmatprep.subr.bf16.mxu0 %v941_v3 }
 0x1e8   :  { %903 = vmatpush3.bf16.msra.mxu0 %v902_v62 }
 0x1e9   :  { %904 = vmatprep.subr.bf16.mxu0 %v941_v3 }
 0x1ec   :  { %906 = vmatpush3.bf16.msra.mxu0 %v905_v1 }
 0x1ed   :  { %907 = vmatprep.subr.bf16.mxu0 %v941_v3 }
 0x1f0   :  { %909 = vmatpush3.bf16.msra.mxu0 %v908_v12 }
 0x1f1   :  { %910 = vmatprep.subr.bf16.mxu0 %v941_v3 }
 0x1f4   :  { %912 = vmatpush3.bf16.msra.mxu0 %v911_v15 }
 0x2aa   :  { %v296_v4 = vpop.f32.mrb[2].mxu0 }
 0x2ab   :  { %v297_v5 = vadd.f32 %v515_v2, %v296_v4  ;;  %v722_v7 = vpop.f32.mrb[3].mxu0 }
 0x2ad   :  { %v300_v8 = vmul.f32 0.01, %v297_v5 }
 0x2af   :  { %v301_v9 = vmax.f32 %v297_v5, %v300_v8 }
 0x2b1   :  { %756 = vmatmul.mubr.f32.vlgmr.msra.gmra.mrb[2].mxu1 %v301_v9 }
 0x384   :  { %v390_v17 = vpop.f32.mrb[2].mxu1 }
 0x385   :  { %v391_v18 = vadd.f32 %v532_v16, %v390_v17  ;;  %v757_v19 = vpop.f32.mrb[3].mxu1 }
 0x387   :  { %v394_v20 = vmul.f32 0.01, %v391_v18 }
 0x389   :  { %v395_v21 = vmax.f32 %v391_v18, %v394_v20 }
 0x38b   :  { %791 = vmatmul.mubr.f32.vlgmr.msra.gmra.mrb[4].mxu0 %v395_v21 }
 0x45e   :  { %v478_v3 = vpop.f32.mrb[4].mxu0 }
 0x45f   :  { %482 = vst [vmem:[#allocation2] sm:$0xff] %v478_v3  ;;  %v792_v22 = vpop.f32.mrb[5].mxu0 }
 0x460   :  { %928 = shalt.err (!%p925_p4)
}
 0x461   :  { %s929_s0 = scalar_lea.hbm %s1297_s5, 128 }
 0x462   :  { %p930_p5 = scmp.ne.s32.totalorder %s1297_s5, %s929_s0  ;;  %p933_p6 = scmp.lt.u32.totalorder %s929_s0, %s1297_s5 }
 0x464   :  { %p935_p7 = pnand %p933_p6, %p930_p5 }
 0x466   :  { %938 = shalt.err (!%p935_p7)
}
 0x467   :  { %492 = dma.vmem_to_hbm [thread:$0]  %s490_s28, 128, %s1297_s5, [#allocation3]  }
 0x468   :  { %939 = dma.done.wait [#allocation3], 128  }
 0x469   :  { %940 = vsyncadd [#allocation3], 4294967168 }
 0x46a   :  { %496 = vsyncpa [#allocation3], 1 }

</bundles_post_ra>
